<compile_context>
chip_gen: v5e
topology: v5e:2x2
jax: 0.10.0
libtpu: 0.0.40
codegen_flags: <defaults>
</compile_context>

<pallas_src>
import functools

import jax
import jax.numpy as jnp
from jax import lax
from jax.experimental import pallas as pl
from jax.experimental.pallas import tpu as pltpu

WINDOW = 3
PAD = (WINDOW - 1) // 2


def conv_relu_kernel(w_ref, b_ref, x_ref, o_ref, *, H, W, N):
    # w_ref: VMEM (C_out, 9)      flattened 3x3 filters (in_channels = 1)
    # b_ref: VMEM (C_out, 1)      bias as a column (lane-broadcast add)
    # x_ref: VMEM (1, N*H*W)      whole batch, flattened, lane-dense
    # o_ref: VMEM (C_out, N*H*W)  channel-packed output
    C_out = o_ref.shape[0]
    HW = H * W
    NHW = N * HW

    x = x_ref[...]            # loaded once; every tap / every channel reuses it
    w = w_ref[...]            # (C_out, 9)

    # Row / column index of every output position within its own image,
    # computed in-kernel (no mask input from HBM).
    flat = lax.broadcasted_iota(jnp.int32, (1, NHW), 1)
    if (W & (W - 1)) == 0 and (H & (H - 1)) == 0:
        # Power-of-two fast path: pure shift/and VPU ops.
        col = flat & (W - 1)
        row = (flat >> (W.bit_length() - 1)) & (H - 1)
    else:
        # General fallback (not exercised in the demo shapes).
        col = flat % W
        row = (flat // W) % H

    # Validity masks per tap offset (None == always valid).
    row_ok = {d: None if d == 0 else
              jnp.logical_and(row + d >= 0, row + d < H)
              for d in range(-PAD, PAD + 1)}
    col_ok = {d: None if d == 0 else
              jnp.logical_and(col + d >= 0, col + d < W)
              for d in range(-PAD, PAD + 1)}

    # Build the 9 shifted + masked taps once (shared by every output channel).
    # Shifts are explicit XLU rolls of the in-register image; masks zero the
    # padding halo, row wraps, and the cross-batch wrap of the circular roll.
    taps = []
    for kh in range(WINDOW):
        dr = kh - PAD
        for kw in range(WINDOW):
            dc = kw - PAD
            off = dr * W + dc                       # tap[f] = x[f + off]
            t = x if off == 0 else pltpu.roll(x, (-off) % NHW, axis=1)
            m = row_ok[dr]
            if col_ok[dc] is not None:
                m = col_ok[dc] if m is None else jnp.logical_and(m, col_ok[dc])
            if m is not None:
                t = jnp.where(m, t, 0.0)
            taps.append(t)

    # Channel-packed MAC: (1, NHW) tap * (C_out, 1) weight column -> (C_out, NHW).
    # Three independent per-kernel-row partial sums keep the VALU chains short.
    parts = []
    for kh in range(WINDOW):
        k0 = kh * WINDOW
        p = taps[k0] * w[:, k0:k0 + 1]
        for kw in range(1, WINDOW):
            k = k0 + kw
            p = p + taps[k] * w[:, k:k + 1]
        parts.append(p)
    acc = parts[0]
    for p in parts[1:]:
        acc = acc + p
    acc = acc + b_ref[...]                          # (C_out, 1) broadcast

    # Single lane-dense, channel-packed store.
    o_ref[...] = jnp.maximum(acc, 0.0)


def standard_conv2d(x_nchw, weight, bias):
    """Forward pass of StandardConv2D: Conv2d(1 -> C_out, 3x3, s=1, p=1) + ReLU.

    x_nchw : (N, 1, H, W) float32
    weight : (C_out, 1, WINDOW, WINDOW) float32
    bias   : (C_out,) float32
    returns: (N, C_out, H, W) float32
    """
    N, C_in, H, W = x_nchw.shape
    assert C_in == 1
    C_out = weight.shape[0]
    NHW = N * H * W

    # Lane-dense flat layouts (contiguous reshapes, free).
    x_flat = x_nchw.reshape(1, NHW).astype(jnp.float32)
    w_flat = weight.reshape(C_out, WINDOW * WINDOW).astype(jnp.float32)
    b_col = bias.reshape(C_out, 1).astype(jnp.float32)

    out_flat = pl.pallas_call(
        functools.partial(conv_relu_kernel, H=H, W=W, N=N),
        out_shape=jax.ShapeDtypeStruct((C_out, NHW), jnp.float32),
        in_specs=[
            pl.BlockSpec(memory_space=pltpu.MemorySpace.VMEM),  # weights
            pl.BlockSpec(memory_space=pltpu.MemorySpace.VMEM),  # bias column
            pl.BlockSpec(memory_space=pltpu.MemorySpace.VMEM),  # flat batch image
        ],
        out_specs=pl.BlockSpec(memory_space=pltpu.MemorySpace.VMEM),
    )(w_flat, b_col, x_flat)

    # (C_out, N*H*W) -> (N, C_out, H, W): tiny one-off relayout done in XLA.
    return jnp.transpose(out_flat.reshape(C_out, N, H, W), (1, 0, 2, 3))


def _init_params(key, out_channels):
    # Deterministic init mimicking PyTorch Conv2d default (uniform +-1/sqrt(fan_in)).
    fan_in = 1 * WINDOW * WINDOW
    bound = 1.0 / jnp.sqrt(jnp.float32(fan_in))
    kw_key, kb_key = jax.random.split(key)
    weight = jax.random.uniform(
        kw_key, (out_channels, 1, WINDOW, WINDOW),
        minval=-bound, maxval=bound, dtype=jnp.float32)
    bias = jax.random.uniform(
        kb_key, (out_channels,), minval=-bound, maxval=bound, dtype=jnp.float32)
    return weight, bias


if __name__ == "__main__":
    key = jax.random.PRNGKey(0)
    k_x, k_p = jax.random.split(key)

    N, C_in, H, W = 2, 1, 16, 16
    out_channels = 4

    x = jax.random.normal(k_x, (N, C_in, H, W), dtype=jnp.float32)
    weight, bias = _init_params(k_p, out_channels)

    out = standard_conv2d(x, weight, bias)
    out = jax.block_until_ready(out)

    # Reference check with XLA's conv (same semantics as PyTorch Conv2d + ReLU).
    ref = lax.conv_general_dilated(
        x, weight, window_strides=(1, 1), padding=((PAD, PAD), (PAD, PAD)),
        dimension_numbers=("NCHW", "OIHW", "NCHW"))
    ref = jnp.maximum(ref + bias[None, :, None, None], 0.0)
    assert out.shape == (N, out_channels, H, W)
    assert jnp.allclose(out, ref, atol=1e-5, rtol=1e-5)

    print("KERNEL_OK")
</pallas_src>

<mosaic_0001>
module attributes {stable_mosaic.version = 11 : i64} {
  func.func @conv_relu_kernel(%arg0: memref<4x9xf32, #tpu.memory_space<vmem>>, %arg1: memref<4x1xf32, #tpu.memory_space<vmem>>, %arg2: memref<1x512xf32, #tpu.memory_space<vmem>>, %arg3: memref<4x512xf32, #tpu.memory_space<vmem>>) attributes {dimension_semantics = [], scalar_prefetch = 0 : i64, scratch_operands = 0 : i64, tpu.core_type = #tpu.core_type<tc>} {
    %c0 = arith.constant 0 : index
    %c0_0 = arith.constant 0 : index
    %0 = vector.load %arg2[%c0, %c0_0] : memref<1x512xf32, #tpu.memory_space<vmem>>, vector<1x512xf32>
    %c0_1 = arith.constant 0 : index
    %c0_2 = arith.constant 0 : index
    %1 = vector.load %arg0[%c0_1, %c0_2] : memref<4x9xf32, #tpu.memory_space<vmem>>, vector<4x9xf32>
    %2 = tpu.iota {dimensions = array<i32: 1>} : vector<1x512xi32>
    %c15_i32 = arith.constant 15 : i32
    %3 = vector.broadcast %c15_i32 : i32 to vector<1x512xi32>
    %4 = arith.andi %2, %3 : vector<1x512xi32>
    %c4_i32 = arith.constant 4 : i32
    %5 = vector.broadcast %c4_i32 : i32 to vector<1x512xi32>
    %6 = arith.shrsi %2, %5 : vector<1x512xi32>
    %c15_i32_3 = arith.constant 15 : i32
    %7 = vector.broadcast %c15_i32_3 : i32 to vector<1x512xi32>
    %8 = arith.andi %6, %7 : vector<1x512xi32>
    %c-1_i32 = arith.constant -1 : i32
    %9 = vector.broadcast %c-1_i32 : i32 to vector<1x512xi32>
    %10 = arith.addi %8, %9 : vector<1x512xi32>
    %c0_i32 = arith.constant 0 : i32
    %11 = vector.broadcast %c0_i32 : i32 to vector<1x512xi32>
    %12 = arith.cmpi sge, %10, %11 : vector<1x512xi32>
    %c-1_i32_4 = arith.constant -1 : i32
    %13 = vector.broadcast %c-1_i32_4 : i32 to vector<1x512xi32>
    %14 = arith.addi %8, %13 : vector<1x512xi32>
    %c16_i32 = arith.constant 16 : i32
    %15 = vector.broadcast %c16_i32 : i32 to vector<1x512xi32>
    %16 = arith.cmpi slt, %14, %15 : vector<1x512xi32>
    %17 = arith.andi %12, %16 : vector<1x512xi1>
    %c1_i32 = arith.constant 1 : i32
    %18 = vector.broadcast %c1_i32 : i32 to vector<1x512xi32>
    %19 = arith.addi %8, %18 : vector<1x512xi32>
    %c0_i32_5 = arith.constant 0 : i32
    %20 = vector.broadcast %c0_i32_5 : i32 to vector<1x512xi32>
    %21 = arith.cmpi sge, %19, %20 : vector<1x512xi32>
    %c1_i32_6 = arith.constant 1 : i32
    %22 = vector.broadcast %c1_i32_6 : i32 to vector<1x512xi32>
    %23 = arith.addi %8, %22 : vector<1x512xi32>
    %c16_i32_7 = arith.constant 16 : i32
    %24 = vector.broadcast %c16_i32_7 : i32 to vector<1x512xi32>
    %25 = arith.cmpi slt, %23, %24 : vector<1x512xi32>
    %26 = arith.andi %21, %25 : vector<1x512xi1>
    %c-1_i32_8 = arith.constant -1 : i32
    %27 = vector.broadcast %c-1_i32_8 : i32 to vector<1x512xi32>
    %28 = arith.addi %4, %27 : vector<1x512xi32>
    %c0_i32_9 = arith.constant 0 : i32
    %29 = vector.broadcast %c0_i32_9 : i32 to vector<1x512xi32>
    %30 = arith.cmpi sge, %28, %29 : vector<1x512xi32>
    %c-1_i32_10 = arith.constant -1 : i32
    %31 = vector.broadcast %c-1_i32_10 : i32 to vector<1x512xi32>
    %32 = arith.addi %4, %31 : vector<1x512xi32>
    %c16_i32_11 = arith.constant 16 : i32
    %33 = vector.broadcast %c16_i32_11 : i32 to vector<1x512xi32>
    %34 = arith.cmpi slt, %32, %33 : vector<1x512xi32>
    %35 = arith.andi %30, %34 : vector<1x512xi1>
    %c1_i32_12 = arith.constant 1 : i32
    %36 = vector.broadcast %c1_i32_12 : i32 to vector<1x512xi32>
    %37 = arith.addi %4, %36 : vector<1x512xi32>
    %c0_i32_13 = arith.constant 0 : i32
    %38 = vector.broadcast %c0_i32_13 : i32 to vector<1x512xi32>
    %39 = arith.cmpi sge, %37, %38 : vector<1x512xi32>
    %c1_i32_14 = arith.constant 1 : i32
    %40 = vector.broadcast %c1_i32_14 : i32 to vector<1x512xi32>
    %41 = arith.addi %4, %40 : vector<1x512xi32>
    %c16_i32_15 = arith.constant 16 : i32
    %42 = vector.broadcast %c16_i32_15 : i32 to vector<1x512xi32>
    %43 = arith.cmpi slt, %41, %42 : vector<1x512xi32>
    %44 = arith.andi %39, %43 : vector<1x512xi1>
    %c17_i32 = arith.constant 17 : i32
    %45 = tpu.dynamic_rotate %0 by %c17_i32 dim 1 : vector<1x512xf32>, i32 -> vector<1x512xf32>
    %46 = arith.andi %17, %35 : vector<1x512xi1>
    %cst = arith.constant 0.000000e+00 : f32
    %47 = vector.broadcast %cst : f32 to vector<1x512xf32>
    %48 = arith.select %46, %45, %47 : vector<1x512xi1>, vector<1x512xf32>
    %c16_i32_16 = arith.constant 16 : i32
    %49 = tpu.dynamic_rotate %0 by %c16_i32_16 dim 1 : vector<1x512xf32>, i32 -> vector<1x512xf32>
    %cst_17 = arith.constant 0.000000e+00 : f32
    %50 = vector.broadcast %cst_17 : f32 to vector<1x512xf32>
    %51 = arith.select %17, %49, %50 : vector<1x512xi1>, vector<1x512xf32>
    %c15_i32_18 = arith.constant 15 : i32
    %52 = tpu.dynamic_rotate %0 by %c15_i32_18 dim 1 : vector<1x512xf32>, i32 -> vector<1x512xf32>
    %53 = arith.andi %17, %44 : vector<1x512xi1>
    %cst_19 = arith.constant 0.000000e+00 : f32
    %54 = vector.broadcast %cst_19 : f32 to vector<1x512xf32>
    %55 = arith.select %53, %52, %54 : vector<1x512xi1>, vector<1x512xf32>
    %c1_i32_20 = arith.constant 1 : i32
    %56 = tpu.dynamic_rotate %0 by %c1_i32_20 dim 1 : vector<1x512xf32>, i32 -> vector<1x512xf32>
    %cst_21 = arith.constant 0.000000e+00 : f32
    %57 = vector.broadcast %cst_21 : f32 to vector<1x512xf32>
    %58 = arith.select %35, %56, %57 : vector<1x512xi1>, vector<1x512xf32>
    %c511_i32 = arith.constant 511 : i32
    %59 = tpu.dynamic_rotate %0 by %c511_i32 dim 1 : vector<1x512xf32>, i32 -> vector<1x512xf32>
    %cst_22 = arith.constant 0.000000e+00 : f32
    %60 = vector.broadcast %cst_22 : f32 to vector<1x512xf32>
    %61 = arith.select %44, %59, %60 : vector<1x512xi1>, vector<1x512xf32>
    %c497_i32 = arith.constant 497 : i32
    %62 = tpu.dynamic_rotate %0 by %c497_i32 dim 1 : vector<1x512xf32>, i32 -> vector<1x512xf32>
    %63 = arith.andi %26, %35 : vector<1x512xi1>
    %cst_23 = arith.constant 0.000000e+00 : f32
    %64 = vector.broadcast %cst_23 : f32 to vector<1x512xf32>
    %65 = arith.select %63, %62, %64 : vector<1x512xi1>, vector<1x512xf32>
    %c496_i32 = arith.constant 496 : i32
    %66 = tpu.dynamic_rotate %0 by %c496_i32 dim 1 : vector<1x512xf32>, i32 -> vector<1x512xf32>
    %cst_24 = arith.constant 0.000000e+00 : f32
    %67 = vector.broadcast %cst_24 : f32 to vector<1x512xf32>
    %68 = arith.select %26, %66, %67 : vector<1x512xi1>, vector<1x512xf32>
    %c495_i32 = arith.constant 495 : i32
    %69 = tpu.dynamic_rotate %0 by %c495_i32 dim 1 : vector<1x512xf32>, i32 -> vector<1x512xf32>
    %70 = arith.andi %26, %44 : vector<1x512xi1>
    %cst_25 = arith.constant 0.000000e+00 : f32
    %71 = vector.broadcast %cst_25 : f32 to vector<1x512xf32>
    %72 = arith.select %70, %69, %71 : vector<1x512xi1>, vector<1x512xf32>
    %73 = vector.extract_strided_slice %1 {offsets = [0, 0], sizes = [4, 1], strides = [1, 1]} : vector<4x9xf32> to vector<4x1xf32>
    %74 = vector.broadcast %48 : vector<1x512xf32> to vector<4x512xf32>
    %75 = vector.broadcast %73 : vector<4x1xf32> to vector<4x512xf32>
    %76 = arith.mulf %74, %75 : vector<4x512xf32>
    %77 = vector.extract_strided_slice %1 {offsets = [0, 1], sizes = [4, 1], strides = [1, 1]} : vector<4x9xf32> to vector<4x1xf32>
    %78 = vector.broadcast %51 : vector<1x512xf32> to vector<4x512xf32>
    %79 = vector.broadcast %77 : vector<4x1xf32> to vector<4x512xf32>
    %80 = arith.mulf %78, %79 : vector<4x512xf32>
    %81 = arith.addf %76, %80 : vector<4x512xf32>
    %82 = vector.extract_strided_slice %1 {offsets = [0, 2], sizes = [4, 1], strides = [1, 1]} : vector<4x9xf32> to vector<4x1xf32>
    %83 = vector.broadcast %55 : vector<1x512xf32> to vector<4x512xf32>
    %84 = vector.broadcast %82 : vector<4x1xf32> to vector<4x512xf32>
    %85 = arith.mulf %83, %84 : vector<4x512xf32>
    %86 = arith.addf %81, %85 : vector<4x512xf32>
    %87 = vector.extract_strided_slice %1 {offsets = [0, 3], sizes = [4, 1], strides = [1, 1]} : vector<4x9xf32> to vector<4x1xf32>
    %88 = vector.broadcast %58 : vector<1x512xf32> to vector<4x512xf32>
    %89 = vector.broadcast %87 : vector<4x1xf32> to vector<4x512xf32>
    %90 = arith.mulf %88, %89 : vector<4x512xf32>
    %91 = vector.extract_strided_slice %1 {offsets = [0, 4], sizes = [4, 1], strides = [1, 1]} : vector<4x9xf32> to vector<4x1xf32>
    %92 = vector.broadcast %0 : vector<1x512xf32> to vector<4x512xf32>
    %93 = vector.broadcast %91 : vector<4x1xf32> to vector<4x512xf32>
    %94 = arith.mulf %92, %93 : vector<4x512xf32>
    %95 = arith.addf %90, %94 : vector<4x512xf32>
    %96 = vector.extract_strided_slice %1 {offsets = [0, 5], sizes = [4, 1], strides = [1, 1]} : vector<4x9xf32> to vector<4x1xf32>
    %97 = vector.broadcast %61 : vector<1x512xf32> to vector<4x512xf32>
    %98 = vector.broadcast %96 : vector<4x1xf32> to vector<4x512xf32>
    %99 = arith.mulf %97, %98 : vector<4x512xf32>
    %100 = arith.addf %95, %99 : vector<4x512xf32>
    %101 = vector.extract_strided_slice %1 {offsets = [0, 6], sizes = [4, 1], strides = [1, 1]} : vector<4x9xf32> to vector<4x1xf32>
    %102 = vector.broadcast %65 : vector<1x512xf32> to vector<4x512xf32>
    %103 = vector.broadcast %101 : vector<4x1xf32> to vector<4x512xf32>
    %104 = arith.mulf %102, %103 : vector<4x512xf32>
    %105 = vector.extract_strided_slice %1 {offsets = [0, 7], sizes = [4, 1], strides = [1, 1]} : vector<4x9xf32> to vector<4x1xf32>
    %106 = vector.broadcast %68 : vector<1x512xf32> to vector<4x512xf32>
    %107 = vector.broadcast %105 : vector<4x1xf32> to vector<4x512xf32>
    %108 = arith.mulf %106, %107 : vector<4x512xf32>
    %109 = arith.addf %104, %108 : vector<4x512xf32>
    %110 = vector.extract_strided_slice %1 {offsets = [0, 8], sizes = [4, 1], strides = [1, 1]} : vector<4x9xf32> to vector<4x1xf32>
    %111 = vector.broadcast %72 : vector<1x512xf32> to vector<4x512xf32>
    %112 = vector.broadcast %110 : vector<4x1xf32> to vector<4x512xf32>
    %113 = arith.mulf %111, %112 : vector<4x512xf32>
    %114 = arith.addf %109, %113 : vector<4x512xf32>
    %115 = arith.addf %86, %100 : vector<4x512xf32>
    %116 = arith.addf %115, %114 : vector<4x512xf32>
    %c0_26 = arith.constant 0 : index
    %c0_27 = arith.constant 0 : index
    %117 = vector.load %arg1[%c0_26, %c0_27] : memref<4x1xf32, #tpu.memory_space<vmem>>, vector<4x1xf32>
    %118 = vector.broadcast %117 : vector<4x1xf32> to vector<4x512xf32>
    %119 = arith.addf %116, %118 : vector<4x512xf32>
    %cst_28 = arith.constant 0.000000e+00 : f32
    %120 = vector.broadcast %cst_28 : f32 to vector<4x512xf32>
    %121 = arith.maximumf %119, %120 : vector<4x512xf32>
    %c0_29 = arith.constant 0 : index
    %c0_30 = arith.constant 0 : index
    %122 = vector.load %arg3[%c0_29, %c0_30] : memref<4x512xf32, #tpu.memory_space<vmem>>, vector<4x512xf32>
    tpu.vector_store %arg3[%c0_29, %c0_30], %121 {strides = array<i32>} : memref<4x512xf32, #tpu.memory_space<vmem>>, vector<4x512xf32>,
    return
  }
}

</mosaic_0001>

<bundles_post_ra>
// kernel: tpu_custom_call.1
= control target key start
LH: loop header
LB: loop body
LE: loop exit
PB: predicated region body
PF: predicated region fallthrough
CT: control target
= control target key end

     0   :  { %8 = vsyncpa [#allocation3], 0  ;;  %s1146_s0 = inlined_call_operand.vmem [shape: f32[4,9], index: 0, kind: input, shape index: {}]   ;;  %s1147_s1 = inlined_call_operand.vmem [shape: f32[4,1], index: 1, kind: input, shape index: {}]   ;;  %s1148_s2 = inlined_call_operand.hbm [shape: f32[1,512], index: 2, kind: input, shape index: {}]   ;;  %s1149_s3 = inlined_call_operand.hbm [shape: f32[4,512], index: 3, kind: output, shape index: {}]  }
   0x1   :  { %9 = vsyncpa [#allocation4], 0  ;;  %s19_s14 = sshll.u32 %s1148_s2, 4  ;;  %s536_s15 = smov [#allocation2]   ;;  %s20_s14 = int_to_ptr.hbm [resolvable:$true] %s19_s14 }
   0x2   :  { %s21_s16 = sshll.u32 %s536_s15, 4  ;;  %s22_s16 = int_to_ptr.vmem [resolvable:$true] %s21_s16 }
   0x3   :  { %24 = dma.hbm_to_vmem [thread:$0]  %s20_s14, 64, %s22_s16, [#allocation3]  }
   0x4   :  { %532 = dma.done.wait [#allocation3], 64  }
   0x5   :  { %533 = vsyncadd [#allocation3], 4294967232  ;;  %v29_v0 = vld [vmem:[#allocation2] sm:$0xf]  ;;  %s537_s17 = smov 17   ;;  %s538_s18 = smov 16   ;;  %v31_v11 = vlaneseq }
   0x6   :  { %v578_v1 = vperm.slane %v29_v0, 2  ;;  %v580_v2 = vperm.slane %v29_v0, 0  ;;  %v585_v3 = vperm.slane %v29_v0, 3  ;;  %v587_v4 = vperm.slane %v29_v0, 1  ;;  %s539_s2 = smov 15   ;;  %s540_s19 = smov 1  }
   0x7   :  { %s541_s20 = smov 127   ;;  %v542_v5 = vmov 0   ;;  %s543_s21 = smov 113   ;;  %v544_v6 = vmov 3   ;;  %v545_v7 = vmov 1   ;;  %v548_v9 = vmov 4  }
   0x8   :  { %125 = vrot.lane.b32.xlu1 %v578_v1, %s537_s17  ;;  %142 = vrot.lane.b32.xlu2 %v580_v2, %s538_s18  ;;  %s546_s22 = smov 112   ;;  %s547_s23 = smov 111   ;;  %v30_v8 = vld [vmem:[%s1146_s0] sm:$0xf]  ;;  %v621_v12 = vand.u32 127, %v31_v11  ;;  %v549_v13 = vmov 2  }
   0x9   :  { %121 = vrot.lane.b32.xlu0 %v580_v2, %s537_s17  ;;  %473 = vset.pattern.permute.xlu2 %v542_v5  ;;  %v550_v14 = vmov 6   ;;  %v551_v15 = vmov 5   ;;  %v552_v18 = vmov 7   ;;  %v553_v20 = vmov 8   ;;  %v410_v21 = vld [vmem:[%s1147_s1] sm:$0xf] }
   0xa   :  { %475 = vset.pattern.permute.xlu1 %v544_v6  ;;  %474 = vset.pattern.permute.xlu0 %v545_v7  ;;  %vm150_vm0 = vcmp.lt.s32.totalorder %v621_v12, 16  ;;  %vm167_vm1 = vcmp.lt.s32.totalorder %v621_v12, 15  ;;  %vm129_vm2 = vcmp.lt.s32.totalorder %v621_v12, 17  ;;  %vm188_vm3 = vcmp.lt.s32.totalorder %v621_v12, 1  ;;  %s554_s1 = smov [#allocation5]   ;;  %s444_s30 = sshll.u32 %s1149_s3, 4  ;;  %s445_s30 = int_to_ptr.hbm [resolvable:$true] %s444_s30 }
   0xb   :  { %v33_v50 = vadd.s32 128, %v621_v12  ;;  %v35_v52 = vadd.s32 384, %v621_v12  ;;  %v40_v54 = vshra.s32 %v621_v12, 4  ;;  %v34_v55 = vadd.s32 256, %v621_v12  ;;  %s442_s27 = sshll.u32 %s554_s1, 4  ;;  %s443_s27 = int_to_ptr.vmem [resolvable:$true] %s442_s27 }
   0xc   :  { %v36_v0 = vand.u32 15, %v621_v12 }
   0xd   :  { %v41_v53 = vshra.s32 %v33_v50, 4  ;;  %v43_v57 = vshra.s32 %v35_v52, 4  ;;  %v702_v60 = vand.u32 15, %v40_v54  ;;  %v42_v61 = vshra.s32 %v34_v55, 4 }
   0xf   :  { %v700_v59 = vand.u32 15, %v41_v53  ;;  %v47_v62 = vand.u32 15, %v43_v57  ;;  %v48_v6 = vadd.s32 4294967295, %v702_v60  ;;  %v46_v7 = vand.u32 15, %v42_v61 }
  0x10   :  { %127 = vrot.lane.b32.xlu1 %v585_v3, %s537_s17  ;;  %144 = vrot.lane.b32.xlu2 %v587_v4, %s538_s18 }
  0x11   :  { %123 = vrot.lane.b32.xlu0 %v587_v4, %s537_s17  ;;  %v49_v63 = vadd.s32 4294967295, %v700_v59  ;;  %v51_v11 = vadd.s32 4294967295, %v47_v62  ;;  %vm52_vm6 = vcmp.ge.s32.totalorder %v48_v6, 0  ;;  %vm56_vm7 = vcmp.lt.s32.totalorder %v48_v6, 16 }
  0x12   :  { %vm726_vm12 = vmand %vm52_vm6, %vm56_vm7 }
  0x13   :  { %vm53_vm4 = vcmp.ge.s32.totalorder %v49_v63, 0  ;;  %vm57_vm5 = vcmp.lt.s32.totalorder %v49_v63, 16  ;;  %vm55_vm10 = vcmp.ge.s32.totalorder %v51_v11, 0  ;;  %vm59_vm11 = vcmp.lt.s32.totalorder %v51_v11, 16 }
  0x14   :  { %vm720_vm9 = vmand %vm53_vm4, %vm57_vm5 }
  0x18   :  { %148 = vrot.lane.b32.xlu1 %v585_v3, %s538_s18  ;;  %159 = vrot.lane.b32.xlu2 %v580_v2, %s539_s2 }
  0x19   :  { %146 = vrot.lane.b32.xlu0 %v578_v1, %s538_s18 }
  0x20   :  { %163 = vrot.lane.b32.xlu1 %v578_v1, %s539_s2  ;;  %165 = vrot.lane.b32.xlu2 %v585_v3, %s539_s2 }
  0x21   :  { %161 = vrot.lane.b32.xlu0 %v587_v4, %s539_s2 }
  0x28   :  { %182 = vrot.lane.b32.xlu1 %v587_v4, %s540_s19  ;;  %184 = vrot.lane.b32.xlu2 %v578_v1, %s540_s19 }
  0x29   :  { %180 = vrot.lane.b32.xlu0 %v580_v2, %s540_s19 }
  0x30   :  { %197 = vrot.lane.b32.xlu1 %v580_v2, %s541_s20  ;;  %199 = vrot.lane.b32.xlu2 %v587_v4, %s541_s20 }
  0x31   :  { %186 = vrot.lane.b32.xlu0 %v585_v3, %s540_s19 }
  0x38   :  { %203 = vrot.lane.b32.xlu1 %v585_v3, %s541_s20  ;;  %214 = vrot.lane.b32.xlu2 %v580_v2, %s543_s21 }
  0x39   :  { %201 = vrot.lane.b32.xlu0 %v578_v1, %s541_s20 }
  0x40   :  { %218 = vrot.lane.b32.xlu1 %v578_v1, %s543_s21  ;;  %220 = vrot.lane.b32.xlu2 %v585_v3, %s543_s21 }
  0x41   :  { %216 = vrot.lane.b32.xlu0 %v587_v4, %s543_s21 }
  0x48   :  { %237 = vrot.lane.b32.xlu1 %v587_v4, %s546_s22  ;;  %239 = vrot.lane.b32.xlu2 %v578_v1, %s546_s22 }
  0x49   :  { %235 = vrot.lane.b32.xlu0 %v580_v2, %s546_s22 }
  0x50   :  { %252 = vrot.lane.b32.xlu1 %v580_v2, %s547_s23  ;;  %254 = vrot.lane.b32.xlu2 %v587_v4, %s547_s23 }
  0x51   :  { %241 = vrot.lane.b32.xlu0 %v585_v3, %s546_s22 }
  0x58   :  { %258 = vrot.lane.b32.xlu1 %v585_v3, %s547_s23  ;;  %279 = vperm.xlu2 %473, %v30_v8  }
  0x59   :  { %256 = vrot.lane.b32.xlu0 %v578_v1, %s547_s23 }
  0x60   :  { %323 = vperm.xlu1 %475, %v30_v8   ;;  %476 = vset.pattern.permute.xlu2 %v548_v9  ;;  %v39_v9 = vand.u32 15, %v35_v52 }
  0x61   :  { %291 = vperm.xlu0 %474, %v30_v8   ;;  %331 = vperm.xlu2 %476, %v30_v8  }
  0x62   :  { %v143_v10 = vpop.permute.xlu2 %142 }
  0x68   :  { %477 = vset.pattern.permute.xlu1 %v549_v13  ;;  %v37_v13 = vand.u32 15, %v33_v50  ;;  %v766_v50 = vadd.s32 1, %v39_v9 }
  0x69   :  { %479 = vset.pattern.permute.xlu0 %v550_v14  ;;  %307 = vperm.xlu1 %477, %v30_v8  }
  0x6a   :  { %478 = vset.pattern.permute.xlu2 %v551_v15  ;;  %363 = vperm.xlu0 %479, %v30_v8   ;;  %v145_v16 = vpop.permute.xlu2 %144  ;;  %v715_v15 = vadd.s32 4294967295, %v36_v0  ;;  %v768_v52 = vadd.s32 1, %v37_v13 }
  0x6b   :  { %347 = vperm.xlu2 %478, %v30_v8   ;;  %v626_v17 = vsel %vm150_vm0, %v143_v10, %v145_v16 }
  0x6c   :  { %vm1150_vm13 = vcmp.ge.s32.totalorder %v715_v15, 0 }
  0x6d   :  { %vm754_vm4 = vmand %vm726_vm12, %vm1150_vm13  ;;  %vm105_vm13 = vcmp.lt.s32.totalorder %v768_v52, 16 }
  0x71   :  { %480 = vset.pattern.permute.xlu1 %v552_v18  ;;  %v50_v18 = vadd.s32 4294967295, %v46_v7 }
  0x72   :  { %375 = vperm.xlu1 %480, %v30_v8   ;;  %v160_v19 = vpop.permute.xlu2 %159  ;;  %483 = vset.pattern.permute.xlu0 %v542_v5 }
  0x73   :  { %481 = vset.pattern.permute.xlu2 %v553_v20  ;;  %vm54_vm15 = vcmp.ge.s32.totalorder %v50_v18, 0 }
  0x74   :  { %391 = vperm.xlu2 %481, %v30_v8   ;;  %v709_v8 = vadd.s32 1, %v36_v0 }
  0x76   :  { %vm1151_vm8 = vcmp.lt.s32.totalorder %v709_v8, 16 }
  0x77   :  { %vm737_vm14 = vmand %vm726_vm12, %vm1151_vm8 }
  0x7a   :  { %v126_v22 = vpop.permute.xlu1 %125  ;;  %482 = vset.pattern.permute.xlu1 %v542_v5  ;;  %v166_v23 = vpop.permute.xlu2 %165 }
  0x7b   :  { %v634_v24 = vsel %vm167_vm1, %v166_v23, %v160_v19  ;;  %v122_v25 = vpop.permute.xlu0 %121  ;;  %413 = vperm.xlu1 %482, %v410_v21   ;;  %v724_v21 = vadd.s32 4294967295, %v37_v13 }
  0x7c   :  { %v176_v63 = vsel %vm737_vm14, %v634_v24, 0.0 }
  0x7d   :  { %vm1152_vm5 = vcmp.ge.s32.totalorder %v724_v21, 0 }
  0x82   :  { %v128_v26 = vpop.permute.xlu1 %127  ;;  %v645_v32 = vpop.permute.xlu2 %184 }
  0x83   :  { %v637_v27 = vsel %vm129_vm2, %v126_v22, %v128_v26  ;;  %v639_v28 = vsel %vm129_vm2, %v128_v26, %v122_v25  ;;  %v124_v29 = vpop.permute.xlu0 %123 }
  0x84   :  { %v641_v30 = vsel %vm129_vm2, %v124_v29, %v126_v22  ;;  %v643_v31 = vsel %vm129_vm2, %v122_v25, %v124_v29  ;;  %v138_v0 = vsel %vm754_vm4, %v639_v28, 0.0 }
  0x8a   :  { %v149_v33 = vpop.permute.xlu1 %148  ;;  %v659_v38 = vpop.permute.xlu2 %199 }
  0x8b   :  { %v649_v34 = vsel %vm150_vm0, %v149_v33, %v143_v10  ;;  %v147_v35 = vpop.permute.xlu0 %146 }
  0x8c   :  { %v653_v36 = vsel %vm150_vm0, %v147_v35, %v149_v33  ;;  %v657_v37 = vsel %vm150_vm0, %v145_v16, %v147_v35  ;;  %v38_v16 = vand.u32 15, %v34_v55  ;;  %vm58_vm0 = vcmp.lt.s32.totalorder %v50_v18, 16 }
  0x8d   :  { %vm761_vm6 = vmand %vm54_vm15, %vm58_vm0  ;;  %v67_v55 = vadd.s32 1, %v47_v62  ;;  %v156_v62 = vsel %vm720_vm9, %v626_v17, 0.0  ;;  %vm107_vm0 = vcmp.lt.s32.totalorder %v766_v50, 16  ;;  %v155_v24 = vsel %vm726_vm12, %v649_v34, 0.0 }
  0x8e   :  { %v770_v53 = vadd.s32 1, %v38_v16  ;;  %v157_v28 = vsel %vm761_vm6, %v657_v37, 0.0  ;;  %v64_v34 = vadd.s32 1, %v702_v60  ;;  %v841_v37 = vperm.slane %v176_v63, 0  ;;  %vm847_vm12 = vmand %vm720_vm9, %vm105_vm13 }
  0x8f   :  { %v855_v60 = vadd.s32 1, %v700_v59  ;;  %v864_v35 = vperm.slane %v155_v24, 0  ;;  %v866_v54 = vperm.slane %v157_v28, 0 }
  0x90   :  { %vm106_vm8 = vcmp.lt.s32.totalorder %v770_v53, 16 }
  0x92   :  { %v164_v39 = vpop.permute.xlu1 %163  ;;  %v684_v47 = vpop.permute.xlu2 %214 }
  0x93   :  { %v663_v40 = vsel %vm167_vm1, %v164_v39, %v166_v23  ;;  %v162_v41 = vpop.permute.xlu0 %161  ;;  %v731_v23 = vadd.s32 4294967295, %v38_v16  ;;  %v839_v16 = vperm.slane %v156_v62, 0 }
  0x94   :  { %v667_v42 = vsel %vm167_vm1, %v162_v41, %v164_v39  ;;  %v671_v43 = vsel %vm167_vm1, %v160_v19, %v162_v41  ;;  %v718_v19 = vadd.s32 4294967295, %v39_v9  ;;  %vm741_vm1 = vmand %vm55_vm10, %vm59_vm11 }
  0x95   :  { %vm1153_vm7 = vcmp.ge.s32.totalorder %v731_v23, 0  ;;  %vm784_vm11 = vmand %vm720_vm9, %vm1152_vm5  ;;  %vm71_vm5 = vcmp.ge.s32.totalorder %v67_v55, 0  ;;  %vm205_vm9 = vcmp.lt.s32.totalorder %v621_v12, 127  ;;  %v177_v61 = vsel %vm847_vm12, %v671_v43, 0.0 }
  0x96   :  { %vm87_vm2 = vcmp.ge.s32.totalorder %v718_v19, 0  ;;  %vm792_vm15 = vmand %vm761_vm6, %vm1153_vm7  ;;  %vm75_vm7 = vcmp.lt.s32.totalorder %v67_v55, 16  ;;  %v139_v6 = vsel %vm784_vm11, %v643_v31, 0.0  ;;  %v66_v31 = vadd.s32 1, %v46_v7 }
  0x97   :  { %vm776_vm10 = vmand %vm741_vm1, %vm87_vm2  ;;  %v140_v9 = vsel %vm792_vm15, %v641_v30, 0.0  ;;  %v273_v7 = vperm.slane %v138_v0, 0  ;;  %v274_v25 = vperm.slane %v139_v6, 0  ;;  %vm68_vm11 = vcmp.ge.s32.totalorder %v64_v34, 0 }
  0x98   :  { %v141_v17 = vsel %vm776_vm10, %v637_v27, 0.0  ;;  %v158_v27 = vsel %vm741_vm1, %v653_v36, 0.0  ;;  %vm832_vm14 = vmand %vm741_vm1, %vm107_vm0  ;;  %vm222_vm1 = vcmp.lt.s32.totalorder %v621_v12, 113  ;;  %v275_v20 = vperm.slane %v140_v9, 0 }
  0x99   :  { %v276_v22 = vperm.slane %v141_v17, 0  ;;  %vm859_vm4 = vmand %vm71_vm5, %vm75_vm7  ;;  %v868_v57 = vperm.slane %v158_v27, 0  ;;  %v179_v55 = vsel %vm832_vm14, %v663_v40, 0.0  ;;  %vm70_vm5 = vcmp.ge.s32.totalorder %v66_v31, 0 }
  0x9a   :  { %v674_v44 = vpop.permute.xlu1 %182  ;;  %v691_v51 = vpop.permute.xlu2 %220  ;;  %vm874_vm10 = vmand %vm761_vm6, %vm106_vm8  ;;  %vm74_vm7 = vcmp.lt.s32.totalorder %v66_v31, 16  ;;  %vm72_vm14 = vcmp.lt.s32.totalorder %v64_v34, 16  ;;  %v912_v17 = vperm.slane %v179_v55, 0  ;;  %v925_v9 = vperm.slane %v177_v61, 0 }
  0x9b   :  { %v680_v45 = vsel %vm188_vm3, %v674_v44, %v645_v32  ;;  %v682_v46 = vpop.permute.xlu0 %180  ;;  %vm888_vm15 = vmand %vm859_vm4, %vm87_vm2  ;;  %v226_v40 = vsel %vm222_vm1, %v691_v51, %v684_v47  ;;  %v178_v43 = vsel %vm874_vm10, %v667_v42, 0.0  ;;  %vm1182_vm10 = vcmp.ge.s32.totalorder %v731_v23, 0 }
  0x9c   :  { %v191_v62 = vsel %vm188_vm3, %v682_v46, %v674_v44  ;;  %v234_v24 = vsel %vm888_vm15, %v226_v40, 0.0  ;;  %vm936_vm6 = vmand %vm70_vm5, %vm74_vm7  ;;  %v942_v28 = vperm.slane %v178_v43, 0  ;;  %vm1186_vm12 = vcmp.lt.s32.totalorder %v709_v8, 16 }
  0x9d   :  { %vm954_vm15 = vmand %vm68_vm11, %vm72_vm14  ;;  %vm243_vm5 = vcmp.lt.s32.totalorder %v621_v12, 112  ;;  %v973_v41 = vperm.slane %v234_v24, 0  ;;  %vm260_vm14 = vcmp.lt.s32.totalorder %v621_v12, 111 }
  0xa2   :  { %v686_v48 = vpop.permute.xlu1 %197  ;;  %v706_v5 = vpop.permute.xlu2 %239 }
  0xa3   :  { %v688_v49 = vpop.permute.xlu0 %186  ;;  %v208_v63 = vsel %vm205_vm9, %v686_v48, %v659_v38 }
  0xa4   :  { %v192_v0 = vsel %vm188_vm3, %v688_v49, %v682_v46  ;;  %v189_v44 = vsel %vm188_vm3, %v645_v32, %v688_v49  ;;  %v195_v46 = vsel %vm1182_vm10, %v680_v45, 0.0  ;;  %vm1183_vm3 = vcmp.ge.s32.totalorder %v724_v21, 0 }
  0xa5   :  { %v194_v32 = vsel %vm1183_vm3, %v191_v62, 0.0  ;;  %v946_v27 = vsel %vm1186_vm12, %v208_v63, 0.0  ;;  %vm1187_vm10 = vcmp.ge.s32.totalorder %v715_v15, 0  ;;  %v196_v36 = vsel %vm87_vm2, %v189_v44, 0.0 }
  0xa6   :  { %v950_v45 = vsel %vm1187_vm10, %v192_v0, 0.0  ;;  %v320_v61 = vperm.slane %v195_v46, 0  ;;  %v319_v40 = vperm.slane %v194_v32, 0  ;;  %vm1190_vm2 = vcmp.ge.s32.totalorder %v731_v23, 0 }
  0xa7   :  { %vm979_vm7 = vmand %vm936_vm6, %vm1190_vm2  ;;  %v342_v62 = vperm.slane %v946_v27, 0  ;;  %vm1196_vm12 = vcmp.lt.s32.totalorder %v855_v60, 16  ;;  %vm1197_vm3 = vcmp.ge.s32.totalorder %v855_v60, 0 }
  0xaa   :  { %v696_v56 = vpop.permute.xlu1 %203  ;;  %v746_v29 = vpop.permute.xlu2 %254 }
  0xab   :  { %v698_v58 = vpop.permute.xlu0 %201  ;;  %v209_v42 = vsel %vm205_vm9, %v696_v56, %v686_v48 }
  0xac   :  { %v963_v59 = vsel %vm107_vm0, %v209_v42, 0.0  ;;  %v206_v55 = vsel %vm205_vm9, %v698_v58, %v696_v56  ;;  %v207_v34 = vsel %vm205_vm9, %v659_v38, %v698_v58  ;;  %v318_v38 = vperm.slane %v950_v45, 0  ;;  %vm1193_vm9 = vmmov %vm1187_vm10 }
  0xad   :  { %vm993_vm11 = vmand %vm954_vm15, %vm1193_vm9  ;;  %v345_v43 = vperm.slane %v963_v59, 0  ;;  %v211_v63 = vsel %vm105_vm13, %v207_v34, 0.0  ;;  %v212_v15 = vsel %vm106_vm8, %v206_v55, 0.0 }
  0xae   :  { %vm1016_vm10 = vmand %vm1197_vm3, %vm1196_vm12  ;;  %v343_v58 = vperm.slane %v211_v63, 0 }
  0xb2   :  { %v711_v10 = vpop.permute.xlu1 %218  ;;  %v852_v18 = vpop.permute.xlu2 %279 }
  0xb3   :  { %v713_v14 = vpop.permute.xlu0 %216  ;;  %v223_v56 = vsel %vm222_vm1, %v711_v10, %v691_v51  ;;  %v321_v51 = vperm.slane %v196_v36, 0  ;;  %v282_v44 = vmul.f32 %v852_v18, %v273_v7  ;;  %v283_v42 = vmul.f32 %v852_v18, %v274_v25 }
  0xb4   :  { %v225_v23 = vsel %vm222_vm1, %v684_v47, %v713_v14  ;;  %v233_v0 = vsel %vm979_vm7, %v223_v56, 0.0  ;;  %v284_v47 = vmul.f32 %v852_v18, %v275_v20  ;;  %v285_v24 = vmul.f32 %v852_v18, %v276_v22 }
  0xb5   :  { %v1025_v32 = vsel %vm222_vm1, %v713_v14, %v711_v10  ;;  %v231_v7 = vsel %vm993_vm11, %v225_v23, 0.0  ;;  %vm1200_vm1 = vcmp.ge.s32.totalorder %v724_v21, 0  ;;  %vm1203_vm7 = vcmp.lt.s32.totalorder %v709_v8, 16 }
  0xb6   :  { %vm1048_vm2 = vmand %vm1016_vm10, %vm1200_vm1  ;;  %v344_v23 = vperm.slane %v212_v15, 0 }
  0xb7   :  { %vm1064_vm9 = vmand %vm954_vm15, %vm1203_vm7 }
  0xba   :  { %v748_v33 = vpop.permute.xlu1 %237 }
  0xbb   :  { %v759_v39 = vpop.permute.xlu0 %235  ;;  %v332_v31 = vpop.permute.xlu2 %331  ;;  %v1033_v60 = vsel %vm243_vm5, %v748_v33, %v706_v5 }
  0xbc   :  { %v1039_v18 = vsel %vm243_vm5, %v759_v39, %v748_v33  ;;  %v335_v22 = vmul.f32 %v332_v31, %v587_v4  ;;  %v336_v10 = vmul.f32 %v332_v31, %v578_v1  ;;  %v337_v14 = vmul.f32 %v332_v31, %v585_v3 }
  0xbd   :  { %v249_v8 = vsel %vm1016_vm10, %v1033_v60, 0.0 }
  0xc2   :  { %v820_v11 = vpop.permute.xlu1 %252 }
  0xc3   :  { %v837_v13 = vpop.permute.xlu0 %241  ;;  %v263_v1 = vsel %vm260_vm14, %v820_v11, %v746_v29 }
  0xc4   :  { %v269_v63 = vsel %vm1064_vm9, %v263_v1, 0.0 }
  0xca   :  { %v923_v6 = vpop.permute.xlu1 %258 }
  0xcb   :  { %v940_v49 = vpop.permute.xlu0 %256 }
  0xcc   :  { %v261_v50 = vsel %vm260_vm14, %v940_v49, %v923_v6 }
  0xd2   :  { %v324_v25 = vpop.permute.xlu1 %323 }
  0xd3   :  { %v292_v20 = vpop.permute.xlu0 %291  ;;  %v327_v3 = vmul.f32 %v324_v25, %v319_v40  ;;  %v328_v21 = vmul.f32 %v324_v25, %v320_v61  ;;  %v329_v34 = vmul.f32 %v324_v25, %v321_v51  ;;  %v232_v61 = vsel %vm1048_vm2, %v1025_v32, 0.0 }
  0xd4   :  { %v294_v59 = vmul.f32 %v292_v20, %v864_v35  ;;  %v295_v33 = vmul.f32 %v292_v20, %v839_v16  ;;  %v296_v55 = vmul.f32 %v292_v20, %v866_v54  ;;  %v297_v4 = vmul.f32 %v292_v20, %v868_v57  ;;  %v348_v16 = vpop.permute.xlu2 %347 }
  0xd5   :  { %v360_v20 = vperm.slane %v233_v0, 0  ;;  %v358_v40 = vperm.slane %v231_v7, 0  ;;  %v248_v51 = vsel %vm954_vm15, %v1039_v18, 0.0  ;;  %v339_v15 = vadd.f32 %v335_v22, %v327_v3  ;;  %vm1092_vm15 = vmand %vm859_vm4, %vm107_vm0 }
  0xd6   :  { %v298_v54 = vadd.f32 %v294_v59, %v282_v44  ;;  %v299_v19 = vadd.f32 %v295_v33, %v283_v42  ;;  %v300_v57 = vadd.f32 %v296_v55, %v284_v47  ;;  %v301_v56 = vadd.f32 %v297_v4, %v285_v24  ;;  %vm1120_vm0 = vmand %vm936_vm6, %vm106_vm8 }
  0xd7   :  { %v334_v44 = vmul.f32 %v332_v31, %v580_v2  ;;  %v340_v0 = vadd.f32 %v336_v10, %v328_v21  ;;  %v341_v42 = vadd.f32 %v337_v14, %v329_v34  ;;  %v244_v47 = vsel %vm243_vm5, %v706_v5, %v837_v13 }
  0xd8   :  { %v247_v24 = vsel %vm243_vm5, %v837_v13, %v759_v39  ;;  %v351_v30 = vmul.f32 %v348_v16, %v343_v58  ;;  %v352_v32 = vmul.f32 %v348_v16, %v344_v23  ;;  %v353_v31 = vmul.f32 %v348_v16, %v345_v43  ;;  %vm1104_vm5 = vmand %vm1016_vm10, %vm105_vm13 }
  0xd9   :  { %v264_v5 = vsel %vm260_vm14, %v923_v6, %v820_v11  ;;  %v262_v13 = vsel %vm260_vm14, %v746_v29, %v940_v49  ;;  %v326_v12 = vmul.f32 %v324_v25, %v318_v38  ;;  %v250_v14 = vsel %vm936_vm6, %v244_v47, 0.0 }
  0xda   :  { %v355_v29 = vadd.f32 %v351_v30, %v339_v15  ;;  %v356_v49 = vadd.f32 %v352_v32, %v340_v0  ;;  %v357_v53 = vadd.f32 %v353_v31, %v341_v42  ;;  %v359_v59 = vperm.slane %v232_v61, 0 }
  0xdb   :  { %v308_v43 = vpop.permute.xlu1 %307  ;;  %v371_v33 = vperm.slane %v249_v8, 0  ;;  %v370_v48 = vperm.slane %v248_v51, 0  ;;  %v386_v55 = vperm.slane %v269_v63, 0  ;;  %v338_v34 = vadd.f32 %v334_v44, %v326_v12 }
  0xdc   :  { %v310_v11 = vmul.f32 %v308_v43, %v841_v37  ;;  %v311_v46 = vmul.f32 %v308_v43, %v925_v9  ;;  %v312_v6 = vmul.f32 %v308_v43, %v942_v28  ;;  %v313_v7 = vmul.f32 %v308_v43, %v912_v17  ;;  %v392_v45 = vpop.permute.xlu2 %391  ;;  %v364_v4 = vpop.permute.xlu0 %363 }
  0xdd   :  { %v272_v37 = vsel %vm1092_vm15, %v264_v5, 0.0  ;;  %v270_v9 = vsel %vm1104_vm5, %v262_v13, 0.0  ;;  %v271_v17 = vsel %vm1120_vm0, %v261_v50, 0.0  ;;  %v251_v28 = vsel %vm859_vm4, %v247_v24, 0.0 }
  0xde   :  { %v314_v60 = vadd.f32 %v310_v11, %v298_v54  ;;  %v315_v18 = vadd.f32 %v311_v46, %v299_v19  ;;  %v316_v22 = vadd.f32 %v312_v6, %v300_v57  ;;  %v317_v10 = vadd.f32 %v313_v7, %v301_v56 }
  0xdf   :  { %v389_v1 = vperm.slane %v272_v37, 0  ;;  %v387_v3 = vperm.slane %v270_v9, 0  ;;  %v388_v21 = vperm.slane %v271_v17, 0  ;;  %v372_v35 = vperm.slane %v250_v14, 0 }
  0xe0   :  { %v403_v38 = vadd.f32 %v355_v29, %v315_v18  ;;  %v404_v25 = vadd.f32 %v356_v49, %v316_v22  ;;  %v405_v36 = vadd.f32 %v357_v53, %v317_v10  ;;  %v373_v54 = vperm.slane %v251_v28, 0 }
  0xe1   :  { %v350_v19 = vmul.f32 %v348_v16, %v342_v62  ;;  %v394_v26 = vmul.f32 %v392_v45, %v386_v55  ;;  %v366_v57 = vmul.f32 %v364_v4, %v358_v40  ;;  %v367_v56 = vmul.f32 %v364_v4, %v359_v59 }
  0xe2   :  { %v368_v58 = vmul.f32 %v364_v4, %v360_v20  ;;  %v369_v23 = vmul.f32 %v364_v4, %v973_v41  ;;  %v395_v0 = vmul.f32 %v392_v45, %v387_v3  ;;  %v396_v42 = vmul.f32 %v392_v45, %v388_v21 }
  0xe3   :  { %v397_v47 = vmul.f32 %v392_v45, %v389_v1  ;;  %v354_v44 = vadd.f32 %v350_v19, %v338_v34  ;;  %vm430_vm8 = vcmask 1043456  }
  0xe4   :  { %v376_v61 = vpop.permute.xlu1 %375 }
  0xe5   :  { %v378_v8 = vmul.f32 %v376_v61, %v370_v48  ;;  %v379_v51 = vmul.f32 %v376_v61, %v371_v33  ;;  %v380_v63 = vmul.f32 %v376_v61, %v372_v35  ;;  %v381_v15 = vmul.f32 %v376_v61, %v373_v54 }
  0xe6   :  { %v402_v62 = vadd.f32 %v354_v44, %v314_v60 }
  0xe7   :  { %v382_v24 = vadd.f32 %v378_v8, %v366_v57  ;;  %v383_v30 = vadd.f32 %v379_v51, %v367_v56  ;;  %v384_v32 = vadd.f32 %v380_v63, %v368_v58  ;;  %v385_v27 = vadd.f32 %v381_v15, %v369_v23 }
  0xe9   :  { %v398_v16 = vadd.f32 %v394_v26, %v382_v24  ;;  %v399_v40 = vadd.f32 %v395_v0, %v383_v30  ;;  %v400_v2 = vadd.f32 %v396_v42, %v384_v32  ;;  %v401_v20 = vadd.f32 %v397_v47, %v385_v27 }
  0xeb   :  { %v406_v31 = vadd.f32 %v402_v62, %v398_v16  ;;  %v407_v41 = vadd.f32 %v403_v38, %v399_v40  ;;  %v408_v5 = vadd.f32 %v404_v25, %v400_v2  ;;  %v409_v39 = vadd.f32 %v405_v36, %v401_v20 }
  0xed   :  { %v414_v50 = vpop.permute.xlu1 %413 }
  0xee   :  { %v416_v13 = vadd.f32 %v414_v50, %v406_v31  ;;  %v417_v43 = vadd.f32 %v414_v50, %v407_v41  ;;  %v418_v52 = vadd.f32 %v414_v50, %v408_v5  ;;  %v419_v11 = vadd.f32 %v414_v50, %v409_v39 }
  0xf0   :  { %v421_v46 = vmax.f32 %v417_v43, 0.0  ;;  %v423_v6 = vmax.f32 %v419_v11, 0.0  ;;  %v420_v7 = vmax.f32 %v416_v13, 0.0  ;;  %v422_v12 = vmax.f32 %v418_v52, 0.0 }
  0xf2   :  { %v428_v29 = vrot.slane %v421_v46, 4  ;;  %v429_v49 = vrot.slane %v423_v6, 4 }
  0xf4   :  { %v431_v53 = vsel %vm430_vm8, %v420_v7, %v428_v29  ;;  %v432_v60 = vsel %vm430_vm8, %v422_v12, %v429_v49 }
  0xf5   :  { %435 = vst [vmem:[#allocation5] sm:$0xff] %v431_v53 }
  0xf6   :  { %436 = vst [vmem:[#allocation5 + $0x8] sm:$0xff] %v432_v60 }
  0xf7   :  { %447 = dma.vmem_to_hbm [thread:$0]  %s443_s27, 256, %s445_s30, [#allocation4]  }
  0xf8   :  { %534 = dma.done.wait [#allocation4], 256  }
  0xf9   :  { %535 = vsyncadd [#allocation4], 4294967040 }
  0xfa   :  { %452 = vsyncpa [#allocation3], 1 }
  0xfb   :  { %453 = vsyncpa [#allocation4], 1 }

</bundles_post_ra>
